<compile_context>
chip_gen: v6e
topology: v6e:2x2x1
jax: 0.10.0
libtpu: 0.0.40
codegen_flags: <defaults>
</compile_context>

<pallas_src>
import functools

import jax
import jax.numpy as jnp
from jax.experimental import pallas as pl
from jax.experimental.pallas import tpu as pltpu


def _round_up(x, m):
    return (x + m - 1) // m * m


# ----------------------------- Pallas kernel --------------------------------

def _block_kernel(x_ref, w1_ref, b1_ref, w2_ref, b2_ref, o_ref, y1_ref, *,
                  width, l1, l2):
    """Fused Block for one batch sample.

    x_ref : (Cin, Lx)        flattened (row-major, zero-padded) input image
    w1_ref: (9, Cout, Cin)   conv1 weight, tap-major (dy*3+dx)
    b1_ref: (Cout, 1)        conv1 bias (f32)
    w2_ref: (9, Cout, Cout)  conv2 weight, tap-major
    b2_ref: (Cout, 1)        conv2 bias (f32)
    o_ref : (Cout, L2)       flattened full-width conv2 output (lane-dense)
    y1_ref: (Cout, L1)       VMEM scratch: relu(conv1) in compute dtype
    """
    cout = o_ref.shape[0]
    f32 = jnp.float32

    # conv1: bias-initialized f32 accumulator + 9 shifted MXU matmuls.
    acc1 = jnp.broadcast_to(b1_ref[...], (cout, l1))
    for t in range(9):
        off = (t // 3) * width + (t % 3)          # static offsets -> static slices
        acc1 = acc1 + jnp.dot(w1_ref[t], x_ref[:, off:off + l1],
                              preferred_element_type=f32)
    # ReLU in f32, store to lane-dense VMEM scratch in compute dtype.
    y1_ref[...] = jnp.maximum(acc1, 0.0).astype(y1_ref.dtype)

    # conv2: same formulation on the VMEM-resident intermediate.
    acc2 = jnp.broadcast_to(b2_ref[...], (cout, l2))
    for t in range(9):
        off = (t // 3) * width + (t % 3)
        acc2 = acc2 + jnp.dot(w2_ref[t], y1_ref[:, off:off + l2],
                              preferred_element_type=f32)
    o_ref[...] = acc2.astype(o_ref.dtype)


# ------------------------------ JAX wrapper ----------------------------------

def block_forward(x_nchw, params, *, compute_dtype=jnp.float32):
    """Block.forward: conv2(relu(conv1(x))), VALID 3x3 convs, NCHW in/out."""
    w1, b1, w2, b2 = params
    n, cin, hgt, wid = x_nchw.shape
    cout = w1.shape[0]
    h_out, w_out = hgt - 4, wid - 4

    # Flattened ("full width") lengths; invalid (wrapped) columns are stripped
    # at the very end.  All lane dims are padded to multiples of 128.
    l2 = (hgt - 4) * wid                            # conv2 flat output length
    l2_pad = _round_up(l2, 128)                     # lane-dense output
    l1 = _round_up(2 * wid + 2 + l2_pad, 128)       # lane-dense intermediate
    lx_pad = _round_up(2 * wid + 2 + l1, 128)       # padded flattened input

    # Free reshape of contiguous NCHW data + small zero pad (no transposes).
    x_flat = x_nchw.reshape(n, cin, hgt * wid)
    x_flat = jnp.pad(x_flat, ((0, 0), (0, 0), (0, lx_pad - hgt * wid)))
    x_flat = x_flat.astype(compute_dtype)

    # PyTorch (Cout, Cin, 3, 3) -> tap-major (9, Cout, Cin) for the
    # channel-first ("transposed product") formulation.
    w1t = jnp.transpose(w1, (2, 3, 0, 1)).reshape(9, cout, cin).astype(compute_dtype)
    w2t = jnp.transpose(w2, (2, 3, 0, 1)).reshape(9, cout, cout).astype(compute_dtype)
    b1c = b1.reshape(cout, 1).astype(jnp.float32)
    b2c = b2.reshape(cout, 1).astype(jnp.float32)

    out_dtype = x_nchw.dtype
    kernel = functools.partial(_block_kernel, width=wid, l1=l1, l2=l2_pad)

    itemsize = jnp.dtype(compute_dtype).itemsize
    flops = 2 * 9 * n * (cin * cout * l1 + cout * cout * l2_pad)
    bytes_accessed = (n * cin * lx_pad * itemsize
                      + 9 * cout * (cin + cout) * itemsize
                      + 2 * cout * 4
                      + n * cout * l2_pad * jnp.dtype(out_dtype).itemsize)

    out_flat = pl.pallas_call(
        kernel,
        out_shape=jax.ShapeDtypeStruct((n, cout, l2_pad), out_dtype),
        grid_spec=pltpu.PrefetchScalarGridSpec(
            num_scalar_prefetch=0,
            grid=(n,),
            in_specs=[
                pl.BlockSpec((None, cin, lx_pad), lambda i: (i, 0, 0)),
                pl.BlockSpec((9, cout, cin), lambda i: (0, 0, 0)),
                pl.BlockSpec((cout, 1), lambda i: (0, 0)),
                pl.BlockSpec((9, cout, cout), lambda i: (0, 0, 0)),
                pl.BlockSpec((cout, 1), lambda i: (0, 0)),
            ],
            out_specs=pl.BlockSpec((None, cout, l2_pad), lambda i: (i, 0, 0)),
            scratch_shapes=[pltpu.VMEM((cout, l1), compute_dtype)],
        ),
        compiler_params=pltpu.CompilerParams(
            dimension_semantics=("parallel",),          # megacore split on v7x
            vmem_limit_bytes=48 * 1024 * 1024,          # < v7x's 64 MiB / TC
        ),
        cost_estimate=pl.CostEstimate(
            flops=int(flops), transcendentals=0,
            bytes_accessed=int(bytes_accessed)),
    )(x_flat, w1t, b1c, w2t, b2c)

    # Drop the lane padding and the 4 invalid (wrapped) columns per row.
    out = out_flat[:, :, :l2].reshape(n, cout, h_out, wid)[:, :, :, :w_out]
    return out


# ------------------------- reference (for checking) --------------------------

def _ref_block(x_nchw, params):
    w1, b1, w2, b2 = params
    dn = ("NCHW", "OIHW", "NCHW")
    y = jax.lax.conv_general_dilated(x_nchw, w1, (1, 1), "VALID",
                                     dimension_numbers=dn)
    y = y + b1[None, :, None, None]
    y = jnp.maximum(y, 0.0)
    y = jax.lax.conv_general_dilated(y, w2, (1, 1), "VALID",
                                     dimension_numbers=dn)
    return y + b2[None, :, None, None]


# --------------------------------- main ---------------------------------------

def _init_params(key, in_ch, out_ch):
    """Deterministic init mimicking PyTorch Conv2d default (+/- 1/sqrt(fan_in))."""
    k1, k2, k3, k4 = jax.random.split(key, 4)
    fan1 = in_ch * 9
    fan2 = out_ch * 9
    b1lim = 1.0 / jnp.sqrt(fan1)
    b2lim = 1.0 / jnp.sqrt(fan2)
    w1 = jax.random.uniform(k1, (out_ch, in_ch, 3, 3), jnp.float32, -b1lim, b1lim)
    b1 = jax.random.uniform(k2, (out_ch,), jnp.float32, -b1lim, b1lim)
    w2 = jax.random.uniform(k3, (out_ch, out_ch, 3, 3), jnp.float32, -b2lim, b2lim)
    b2 = jax.random.uniform(k4, (out_ch,), jnp.float32, -b2lim, b2lim)
    return (w1, b1, w2, b2)


if __name__ == "__main__":
    key = jax.random.PRNGKey(0)
    k_x, k_p = jax.random.split(key)

    N, C_IN, C_OUT, H, W = 2, 4, 8, 16, 16
    x = jax.random.normal(k_x, (N, C_IN, H, W), jnp.float32)
    params = _init_params(k_p, C_IN, C_OUT)

    ref = _ref_block(x, params)

    # f32 path: matches the lax.conv reference to tight tolerance.
    fwd_f32 = jax.jit(functools.partial(block_forward, compute_dtype=jnp.float32))
    out_f32 = jax.block_until_ready(fwd_f32(x, params))
    assert out_f32.shape == (N, C_OUT, H - 4, W - 4), out_f32.shape
    assert jnp.allclose(out_f32, ref, atol=1e-4, rtol=1e-4), (
        float(jnp.max(jnp.abs(out_f32 - ref))))

    # bf16 MXU path (v6e/v7x-friendly): f32 accumulation + f32 epilogue.
    fwd_bf16 = jax.jit(functools.partial(block_forward, compute_dtype=jnp.bfloat16))
    out_bf16 = jax.block_until_ready(fwd_bf16(x, params))
    assert out_bf16.shape == (N, C_OUT, H - 4, W - 4), out_bf16.shape
    assert jnp.allclose(out_bf16, ref, atol=5e-2, rtol=5e-2), (
        float(jnp.max(jnp.abs(out_bf16 - ref))))

    print("KERNEL_OK")
</pallas_src>

<mosaic_0001>
module attributes {stable_mosaic.version = 11 : i64} {
  func.func @_block_kernel(%arg0: i32, %arg1: memref<1x4x512xf32, #tpu.memory_space<vmem>>, %arg2: memref<9x8x4xf32, #tpu.memory_space<vmem>>, %arg3: memref<8x1xf32, #tpu.memory_space<vmem>>, %arg4: memref<9x8x8xf32, #tpu.memory_space<vmem>>, %arg5: memref<8x1xf32, #tpu.memory_space<vmem>>, %arg6: memref<1x8x256xf32, #tpu.memory_space<vmem>>, %arg7: memref<8x384xf32, #tpu.memory_space<vmem>>) attributes {dimension_semantics = [#tpu.dimension_semantics<parallel>], iteration_bounds = array<i64: 2>, scalar_prefetch = 0 : i64, scratch_operands = 1 : i64, tpu.core_type = #tpu.core_type<tc>, window_params = [{transform_indices = @transform_0, window_bounds = array<i64: 1, 4, 512>}, {pipeline_mode = #tpu.pipeline_mode<synchronous>, transform_indices = @transform_1, window_bounds = array<i64: 9, 8, 4>}, {pipeline_mode = #tpu.pipeline_mode<synchronous>, transform_indices = @transform_2, window_bounds = array<i64: 8, 1>}, {pipeline_mode = #tpu.pipeline_mode<synchronous>, transform_indices = @transform_3, window_bounds = array<i64: 9, 8, 8>}, {pipeline_mode = #tpu.pipeline_mode<synchronous>, transform_indices = @transform_4, window_bounds = array<i64: 8, 1>}, {transform_indices = @transform_5, window_bounds = array<i64: 1, 8, 256>}]} {
    %c0 = arith.constant 0 : index
    %c0_0 = arith.constant 0 : index
    %0 = vector.load %arg3[%c0, %c0_0] : memref<8x1xf32, #tpu.memory_space<vmem>>, vector<8x1xf32>
    %1 = vector.shape_cast %0 : vector<8x1xf32> to vector<8x1xf32>
    %2 = vector.broadcast %1 : vector<8x1xf32> to vector<8x384xf32>
    %c0_1 = arith.constant 0 : index
    %c0_2 = arith.constant 0 : index
    %c0_3 = arith.constant 0 : index
    %3 = vector.load %arg2[%c0_1, %c0_2, %c0_3] : memref<9x8x4xf32, #tpu.memory_space<vmem>>, vector<1x8x4xf32>
    %4 = vector.shape_cast %3 : vector<1x8x4xf32> to vector<8x4xf32>
    %c0_4 = arith.constant 0 : index
    %c0_5 = arith.constant 0 : index
    %c0_6 = arith.constant 0 : index
    %5 = vector.load %arg1[%c0_4, %c0_5, %c0_6] : memref<1x4x512xf32, #tpu.memory_space<vmem>>, vector<1x4x384xf32>
    %6 = vector.shape_cast %5 : vector<1x4x384xf32> to vector<4x384xf32>
    %cst = arith.constant dense<0.000000e+00> : vector<8x384xf32>
    %7 = tpu.matmul %4, %6, %cst {dimension_numbers = #tpu.dot_dimension_numbers<[1], [0], [0], [1], [0, 0, 1, 1], [], []>} : vector<8x4xf32>, vector<4x384xf32>, vector<8x384xf32> -> vector<8x384xf32>
    %8 = arith.addf %2, %7 : vector<8x384xf32>
    %c1 = arith.constant 1 : index
    %c0_7 = arith.constant 0 : index
    %c0_8 = arith.constant 0 : index
    %9 = vector.load %arg2[%c1, %c0_7, %c0_8] : memref<9x8x4xf32, #tpu.memory_space<vmem>>, vector<1x8x4xf32>
    %10 = vector.shape_cast %9 : vector<1x8x4xf32> to vector<8x4xf32>
    %c0_9 = arith.constant 0 : index
    %c0_10 = arith.constant 0 : index
    %c1_11 = arith.constant 1 : index
    %11 = vector.load %arg1[%c0_9, %c0_10, %c1_11] : memref<1x4x512xf32, #tpu.memory_space<vmem>>, vector<1x4x384xf32>
    %12 = vector.shape_cast %11 : vector<1x4x384xf32> to vector<4x384xf32>
    %cst_12 = arith.constant dense<0.000000e+00> : vector<8x384xf32>
    %13 = tpu.matmul %10, %12, %cst_12 {dimension_numbers = #tpu.dot_dimension_numbers<[1], [0], [0], [1], [0, 0, 1, 1], [], []>} : vector<8x4xf32>, vector<4x384xf32>, vector<8x384xf32> -> vector<8x384xf32>
    %14 = arith.addf %8, %13 : vector<8x384xf32>
    %c2 = arith.constant 2 : index
    %c0_13 = arith.constant 0 : index
    %c0_14 = arith.constant 0 : index
    %15 = vector.load %arg2[%c2, %c0_13, %c0_14] : memref<9x8x4xf32, #tpu.memory_space<vmem>>, vector<1x8x4xf32>
    %16 = vector.shape_cast %15 : vector<1x8x4xf32> to vector<8x4xf32>
    %c0_15 = arith.constant 0 : index
    %c0_16 = arith.constant 0 : index
    %c2_17 = arith.constant 2 : index
    %17 = vector.load %arg1[%c0_15, %c0_16, %c2_17] : memref<1x4x512xf32, #tpu.memory_space<vmem>>, vector<1x4x384xf32>
    %18 = vector.shape_cast %17 : vector<1x4x384xf32> to vector<4x384xf32>
    %cst_18 = arith.constant dense<0.000000e+00> : vector<8x384xf32>
    %19 = tpu.matmul %16, %18, %cst_18 {dimension_numbers = #tpu.dot_dimension_numbers<[1], [0], [0], [1], [0, 0, 1, 1], [], []>} : vector<8x4xf32>, vector<4x384xf32>, vector<8x384xf32> -> vector<8x384xf32>
    %20 = arith.addf %14, %19 : vector<8x384xf32>
    %c3 = arith.constant 3 : index
    %c0_19 = arith.constant 0 : index
    %c0_20 = arith.constant 0 : index
    %21 = vector.load %arg2[%c3, %c0_19, %c0_20] : memref<9x8x4xf32, #tpu.memory_space<vmem>>, vector<1x8x4xf32>
    %22 = vector.shape_cast %21 : vector<1x8x4xf32> to vector<8x4xf32>
    %c0_21 = arith.constant 0 : index
    %c0_22 = arith.constant 0 : index
    %c16 = arith.constant 16 : index
    %23 = vector.load %arg1[%c0_21, %c0_22, %c16] : memref<1x4x512xf32, #tpu.memory_space<vmem>>, vector<1x4x384xf32>
    %24 = vector.shape_cast %23 : vector<1x4x384xf32> to vector<4x384xf32>
    %cst_23 = arith.constant dense<0.000000e+00> : vector<8x384xf32>
    %25 = tpu.matmul %22, %24, %cst_23 {dimension_numbers = #tpu.dot_dimension_numbers<[1], [0], [0], [1], [0, 0, 1, 1], [], []>} : vector<8x4xf32>, vector<4x384xf32>, vector<8x384xf32> -> vector<8x384xf32>
    %26 = arith.addf %20, %25 : vector<8x384xf32>
    %c4 = arith.constant 4 : index
    %c0_24 = arith.constant 0 : index
    %c0_25 = arith.constant 0 : index
    %27 = vector.load %arg2[%c4, %c0_24, %c0_25] : memref<9x8x4xf32, #tpu.memory_space<vmem>>, vector<1x8x4xf32>
    %28 = vector.shape_cast %27 : vector<1x8x4xf32> to vector<8x4xf32>
    %c0_26 = arith.constant 0 : index
    %c0_27 = arith.constant 0 : index
    %c17 = arith.constant 17 : index
    %29 = vector.load %arg1[%c0_26, %c0_27, %c17] : memref<1x4x512xf32, #tpu.memory_space<vmem>>, vector<1x4x384xf32>
    %30 = vector.shape_cast %29 : vector<1x4x384xf32> to vector<4x384xf32>
    %cst_28 = arith.constant dense<0.000000e+00> : vector<8x384xf32>
    %31 = tpu.matmul %28, %30, %cst_28 {dimension_numbers = #tpu.dot_dimension_numbers<[1], [0], [0], [1], [0, 0, 1, 1], [], []>} : vector<8x4xf32>, vector<4x384xf32>, vector<8x384xf32> -> vector<8x384xf32>
    %32 = arith.addf %26, %31 : vector<8x384xf32>
    %c5 = arith.constant 5 : index
    %c0_29 = arith.constant 0 : index
    %c0_30 = arith.constant 0 : index
    %33 = vector.load %arg2[%c5, %c0_29, %c0_30] : memref<9x8x4xf32, #tpu.memory_space<vmem>>, vector<1x8x4xf32>
    %34 = vector.shape_cast %33 : vector<1x8x4xf32> to vector<8x4xf32>
    %c0_31 = arith.constant 0 : index
    %c0_32 = arith.constant 0 : index
    %c18 = arith.constant 18 : index
    %35 = vector.load %arg1[%c0_31, %c0_32, %c18] : memref<1x4x512xf32, #tpu.memory_space<vmem>>, vector<1x4x384xf32>
    %36 = vector.shape_cast %35 : vector<1x4x384xf32> to vector<4x384xf32>
    %cst_33 = arith.constant dense<0.000000e+00> : vector<8x384xf32>
    %37 = tpu.matmul %34, %36, %cst_33 {dimension_numbers = #tpu.dot_dimension_numbers<[1], [0], [0], [1], [0, 0, 1, 1], [], []>} : vector<8x4xf32>, vector<4x384xf32>, vector<8x384xf32> -> vector<8x384xf32>
    %38 = arith.addf %32, %37 : vector<8x384xf32>
    %c6 = arith.constant 6 : index
    %c0_34 = arith.constant 0 : index
    %c0_35 = arith.constant 0 : index
    %39 = vector.load %arg2[%c6, %c0_34, %c0_35] : memref<9x8x4xf32, #tpu.memory_space<vmem>>, vector<1x8x4xf32>
    %40 = vector.shape_cast %39 : vector<1x8x4xf32> to vector<8x4xf32>
    %c0_36 = arith.constant 0 : index
    %c0_37 = arith.constant 0 : index
    %c32 = arith.constant 32 : index
    %41 = vector.load %arg1[%c0_36, %c0_37, %c32] : memref<1x4x512xf32, #tpu.memory_space<vmem>>, vector<1x4x384xf32>
    %42 = vector.shape_cast %41 : vector<1x4x384xf32> to vector<4x384xf32>
    %cst_38 = arith.constant dense<0.000000e+00> : vector<8x384xf32>
    %43 = tpu.matmul %40, %42, %cst_38 {dimension_numbers = #tpu.dot_dimension_numbers<[1], [0], [0], [1], [0, 0, 1, 1], [], []>} : vector<8x4xf32>, vector<4x384xf32>, vector<8x384xf32> -> vector<8x384xf32>
    %44 = arith.addf %38, %43 : vector<8x384xf32>
    %c7 = arith.constant 7 : index
    %c0_39 = arith.constant 0 : index
    %c0_40 = arith.constant 0 : index
    %45 = vector.load %arg2[%c7, %c0_39, %c0_40] : memref<9x8x4xf32, #tpu.memory_space<vmem>>, vector<1x8x4xf32>
    %46 = vector.shape_cast %45 : vector<1x8x4xf32> to vector<8x4xf32>
    %c0_41 = arith.constant 0 : index
    %c0_42 = arith.constant 0 : index
    %c33 = arith.constant 33 : index
    %47 = vector.load %arg1[%c0_41, %c0_42, %c33] : memref<1x4x512xf32, #tpu.memory_space<vmem>>, vector<1x4x384xf32>
    %48 = vector.shape_cast %47 : vector<1x4x384xf32> to vector<4x384xf32>
    %cst_43 = arith.constant dense<0.000000e+00> : vector<8x384xf32>
    %49 = tpu.matmul %46, %48, %cst_43 {dimension_numbers = #tpu.dot_dimension_numbers<[1], [0], [0], [1], [0, 0, 1, 1], [], []>} : vector<8x4xf32>, vector<4x384xf32>, vector<8x384xf32> -> vector<8x384xf32>
    %50 = arith.addf %44, %49 : vector<8x384xf32>
    %c8 = arith.constant 8 : index
    %c0_44 = arith.constant 0 : index
    %c0_45 = arith.constant 0 : index
    %51 = vector.load %arg2[%c8, %c0_44, %c0_45] : memref<9x8x4xf32, #tpu.memory_space<vmem>>, vector<1x8x4xf32>
    %52 = vector.shape_cast %51 : vector<1x8x4xf32> to vector<8x4xf32>
    %c0_46 = arith.constant 0 : index
    %c0_47 = arith.constant 0 : index
    %c34 = arith.constant 34 : index
    %53 = vector.load %arg1[%c0_46, %c0_47, %c34] : memref<1x4x512xf32, #tpu.memory_space<vmem>>, vector<1x4x384xf32>
    %54 = vector.shape_cast %53 : vector<1x4x384xf32> to vector<4x384xf32>
    %cst_48 = arith.constant dense<0.000000e+00> : vector<8x384xf32>
    %55 = tpu.matmul %52, %54, %cst_48 {dimension_numbers = #tpu.dot_dimension_numbers<[1], [0], [0], [1], [0, 0, 1, 1], [], []>} : vector<8x4xf32>, vector<4x384xf32>, vector<8x384xf32> -> vector<8x384xf32>
    %56 = arith.addf %50, %55 : vector<8x384xf32>
    %cst_49 = arith.constant 0.000000e+00 : f32
    %57 = vector.broadcast %cst_49 : f32 to vector<8x384xf32>
    %58 = arith.maximumf %56, %57 : vector<8x384xf32>
    %c0_50 = arith.constant 0 : index
    %c0_51 = arith.constant 0 : index
    %59 = vector.load %arg7[%c0_50, %c0_51] : memref<8x384xf32, #tpu.memory_space<vmem>>, vector<8x384xf32>
    tpu.vector_store %arg7[%c0_50, %c0_51], %58 {strides = array<i32>} : memref<8x384xf32, #tpu.memory_space<vmem>>, vector<8x384xf32>,
    %c0_52 = arith.constant 0 : index
    %c0_53 = arith.constant 0 : index
    %60 = vector.load %arg5[%c0_52, %c0_53] : memref<8x1xf32, #tpu.memory_space<vmem>>, vector<8x1xf32>
    %61 = vector.shape_cast %60 : vector<8x1xf32> to vector<8x1xf32>
    %62 = vector.broadcast %61 : vector<8x1xf32> to vector<8x256xf32>
    %c0_54 = arith.constant 0 : index
    %c0_55 = arith.constant 0 : index
    %c0_56 = arith.constant 0 : index
    %63 = vector.load %arg4[%c0_54, %c0_55, %c0_56] : memref<9x8x8xf32, #tpu.memory_space<vmem>>, vector<1x8x8xf32>
    %64 = vector.shape_cast %63 : vector<1x8x8xf32> to vector<8x8xf32>
    %c0_57 = arith.constant 0 : index
    %c0_58 = arith.constant 0 : index
    %65 = vector.load %arg7[%c0_57, %c0_58] : memref<8x384xf32, #tpu.memory_space<vmem>>, vector<8x256xf32>
    %cst_59 = arith.constant dense<0.000000e+00> : vector<8x256xf32>
    %66 = tpu.matmul %64, %65, %cst_59 {dimension_numbers = #tpu.dot_dimension_numbers<[1], [0], [0], [1], [0, 0, 1, 1], [], []>} : vector<8x8xf32>, vector<8x256xf32>, vector<8x256xf32> -> vector<8x256xf32>
    %67 = arith.addf %62, %66 : vector<8x256xf32>
    %c1_60 = arith.constant 1 : index
    %c0_61 = arith.constant 0 : index
    %c0_62 = arith.constant 0 : index
    %68 = vector.load %arg4[%c1_60, %c0_61, %c0_62] : memref<9x8x8xf32, #tpu.memory_space<vmem>>, vector<1x8x8xf32>
    %69 = vector.shape_cast %68 : vector<1x8x8xf32> to vector<8x8xf32>
    %c0_63 = arith.constant 0 : index
    %c1_64 = arith.constant 1 : index
    %70 = vector.load %arg7[%c0_63, %c1_64] : memref<8x384xf32, #tpu.memory_space<vmem>>, vector<8x256xf32>
    %cst_65 = arith.constant dense<0.000000e+00> : vector<8x256xf32>
    %71 = tpu.matmul %69, %70, %cst_65 {dimension_numbers = #tpu.dot_dimension_numbers<[1], [0], [0], [1], [0, 0, 1, 1], [], []>} : vector<8x8xf32>, vector<8x256xf32>, vector<8x256xf32> -> vector<8x256xf32>
    %72 = arith.addf %67, %71 : vector<8x256xf32>
    %c2_66 = arith.constant 2 : index
    %c0_67 = arith.constant 0 : index
    %c0_68 = arith.constant 0 : index
    %73 = vector.load %arg4[%c2_66, %c0_67, %c0_68] : memref<9x8x8xf32, #tpu.memory_space<vmem>>, vector<1x8x8xf32>
    %74 = vector.shape_cast %73 : vector<1x8x8xf32> to vector<8x8xf32>
    %c0_69 = arith.constant 0 : index
    %c2_70 = arith.constant 2 : index
    %75 = vector.load %arg7[%c0_69, %c2_70] : memref<8x384xf32, #tpu.memory_space<vmem>>, vector<8x256xf32>
    %cst_71 = arith.constant dense<0.000000e+00> : vector<8x256xf32>
    %76 = tpu.matmul %74, %75, %cst_71 {dimension_numbers = #tpu.dot_dimension_numbers<[1], [0], [0], [1], [0, 0, 1, 1], [], []>} : vector<8x8xf32>, vector<8x256xf32>, vector<8x256xf32> -> vector<8x256xf32>
    %77 = arith.addf %72, %76 : vector<8x256xf32>
    %c3_72 = arith.constant 3 : index
    %c0_73 = arith.constant 0 : index
    %c0_74 = arith.constant 0 : index
    %78 = vector.load %arg4[%c3_72, %c0_73, %c0_74] : memref<9x8x8xf32, #tpu.memory_space<vmem>>, vector<1x8x8xf32>
    %79 = vector.shape_cast %78 : vector<1x8x8xf32> to vector<8x8xf32>
    %c0_75 = arith.constant 0 : index
    %c16_76 = arith.constant 16 : index
    %80 = vector.load %arg7[%c0_75, %c16_76] : memref<8x384xf32, #tpu.memory_space<vmem>>, vector<8x256xf32>
    %cst_77 = arith.constant dense<0.000000e+00> : vector<8x256xf32>
    %81 = tpu.matmul %79, %80, %cst_77 {dimension_numbers = #tpu.dot_dimension_numbers<[1], [0], [0], [1], [0, 0, 1, 1], [], []>} : vector<8x8xf32>, vector<8x256xf32>, vector<8x256xf32> -> vector<8x256xf32>
    %82 = arith.addf %77, %81 : vector<8x256xf32>
    %c4_78 = arith.constant 4 : index
    %c0_79 = arith.constant 0 : index
    %c0_80 = arith.constant 0 : index
    %83 = vector.load %arg4[%c4_78, %c0_79, %c0_80] : memref<9x8x8xf32, #tpu.memory_space<vmem>>, vector<1x8x8xf32>
    %84 = vector.shape_cast %83 : vector<1x8x8xf32> to vector<8x8xf32>
    %c0_81 = arith.constant 0 : index
    %c17_82 = arith.constant 17 : index
    %85 = vector.load %arg7[%c0_81, %c17_82] : memref<8x384xf32, #tpu.memory_space<vmem>>, vector<8x256xf32>
    %cst_83 = arith.constant dense<0.000000e+00> : vector<8x256xf32>
    %86 = tpu.matmul %84, %85, %cst_83 {dimension_numbers = #tpu.dot_dimension_numbers<[1], [0], [0], [1], [0, 0, 1, 1], [], []>} : vector<8x8xf32>, vector<8x256xf32>, vector<8x256xf32> -> vector<8x256xf32>
    %87 = arith.addf %82, %86 : vector<8x256xf32>
    %c5_84 = arith.constant 5 : index
    %c0_85 = arith.constant 0 : index
    %c0_86 = arith.constant 0 : index
    %88 = vector.load %arg4[%c5_84, %c0_85, %c0_86] : memref<9x8x8xf32, #tpu.memory_space<vmem>>, vector<1x8x8xf32>
    %89 = vector.shape_cast %88 : vector<1x8x8xf32> to vector<8x8xf32>
    %c0_87 = arith.constant 0 : index
    %c18_88 = arith.constant 18 : index
    %90 = vector.load %arg7[%c0_87, %c18_88] : memref<8x384xf32, #tpu.memory_space<vmem>>, vector<8x256xf32>
    %cst_89 = arith.constant dense<0.000000e+00> : vector<8x256xf32>
    %91 = tpu.matmul %89, %90, %cst_89 {dimension_numbers = #tpu.dot_dimension_numbers<[1], [0], [0], [1], [0, 0, 1, 1], [], []>} : vector<8x8xf32>, vector<8x256xf32>, vector<8x256xf32> -> vector<8x256xf32>
    %92 = arith.addf %87, %91 : vector<8x256xf32>
    %c6_90 = arith.constant 6 : index
    %c0_91 = arith.constant 0 : index
    %c0_92 = arith.constant 0 : index
    %93 = vector.load %arg4[%c6_90, %c0_91, %c0_92] : memref<9x8x8xf32, #tpu.memory_space<vmem>>, vector<1x8x8xf32>
    %94 = vector.shape_cast %93 : vector<1x8x8xf32> to vector<8x8xf32>
    %c0_93 = arith.constant 0 : index
    %c32_94 = arith.constant 32 : index
    %95 = vector.load %arg7[%c0_93, %c32_94] : memref<8x384xf32, #tpu.memory_space<vmem>>, vector<8x256xf32>
    %cst_95 = arith.constant dense<0.000000e+00> : vector<8x256xf32>
    %96 = tpu.matmul %94, %95, %cst_95 {dimension_numbers = #tpu.dot_dimension_numbers<[1], [0], [0], [1], [0, 0, 1, 1], [], []>} : vector<8x8xf32>, vector<8x256xf32>, vector<8x256xf32> -> vector<8x256xf32>
    %97 = arith.addf %92, %96 : vector<8x256xf32>
    %c7_96 = arith.constant 7 : index
    %c0_97 = arith.constant 0 : index
    %c0_98 = arith.constant 0 : index
    %98 = vector.load %arg4[%c7_96, %c0_97, %c0_98] : memref<9x8x8xf32, #tpu.memory_space<vmem>>, vector<1x8x8xf32>
    %99 = vector.shape_cast %98 : vector<1x8x8xf32> to vector<8x8xf32>
    %c0_99 = arith.constant 0 : index
    %c33_100 = arith.constant 33 : index
    %100 = vector.load %arg7[%c0_99, %c33_100] : memref<8x384xf32, #tpu.memory_space<vmem>>, vector<8x256xf32>
    %cst_101 = arith.constant dense<0.000000e+00> : vector<8x256xf32>
    %101 = tpu.matmul %99, %100, %cst_101 {dimension_numbers = #tpu.dot_dimension_numbers<[1], [0], [0], [1], [0, 0, 1, 1], [], []>} : vector<8x8xf32>, vector<8x256xf32>, vector<8x256xf32> -> vector<8x256xf32>
    %102 = arith.addf %97, %101 : vector<8x256xf32>
    %c8_102 = arith.constant 8 : index
    %c0_103 = arith.constant 0 : index
    %c0_104 = arith.constant 0 : index
    %103 = vector.load %arg4[%c8_102, %c0_103, %c0_104] : memref<9x8x8xf32, #tpu.memory_space<vmem>>, vector<1x8x8xf32>
    %104 = vector.shape_cast %103 : vector<1x8x8xf32> to vector<8x8xf32>
    %c0_105 = arith.constant 0 : index
    %c34_106 = arith.constant 34 : index
    %105 = vector.load %arg7[%c0_105, %c34_106] : memref<8x384xf32, #tpu.memory_space<vmem>>, vector<8x256xf32>
    %cst_107 = arith.constant dense<0.000000e+00> : vector<8x256xf32>
    %106 = tpu.matmul %104, %105, %cst_107 {dimension_numbers = #tpu.dot_dimension_numbers<[1], [0], [0], [1], [0, 0, 1, 1], [], []>} : vector<8x8xf32>, vector<8x256xf32>, vector<8x256xf32> -> vector<8x256xf32>
    %107 = arith.addf %102, %106 : vector<8x256xf32>
    %c0_108 = arith.constant 0 : index
    %c0_109 = arith.constant 0 : index
    %c0_110 = arith.constant 0 : index
    %108 = vector.load %arg6[%c0_108, %c0_109, %c0_110] : memref<1x8x256xf32, #tpu.memory_space<vmem>>, vector<1x8x256xf32>
    %109 = vector.shape_cast %108 : vector<1x8x256xf32> to vector<8x256xf32>
    %110 = vector.shape_cast %107 : vector<8x256xf32> to vector<1x8x256xf32>
    tpu.vector_store %arg6[%c0_108, %c0_109, %c0_110], %110 {strides = array<i32>} : memref<1x8x256xf32, #tpu.memory_space<vmem>>, vector<1x8x256xf32>,
    return
  }
  func.func @transform_0(%arg0: i32) -> (i32, i32, i32) {
    %c0_i32 = arith.constant 0 : i32
    %c0_i32_0 = arith.constant 0 : i32
    %c0_i32_1 = arith.constant 0 : i32
    return %arg0, %c0_i32, %c0_i32_0 : i32, i32, i32
  }
  func.func @transform_1(%arg0: i32) -> (i32, i32, i32) {
    %c0_i32 = arith.constant 0 : i32
    %c0_i32_0 = arith.constant 0 : i32
    %c0_i32_1 = arith.constant 0 : i32
    %c0_i32_2 = arith.constant 0 : i32
    return %c0_i32, %c0_i32_0, %c0_i32_1 : i32, i32, i32
  }
  func.func @transform_2(%arg0: i32) -> (i32, i32) {
    %c0_i32 = arith.constant 0 : i32
    %c0_i32_0 = arith.constant 0 : i32
    %c0_i32_1 = arith.constant 0 : i32
    return %c0_i32, %c0_i32_0 : i32, i32
  }
  func.func @transform_3(%arg0: i32) -> (i32, i32, i32) {
    %c0_i32 = arith.constant 0 : i32
    %c0_i32_0 = arith.constant 0 : i32
    %c0_i32_1 = arith.constant 0 : i32
    %c0_i32_2 = arith.constant 0 : i32
    return %c0_i32, %c0_i32_0, %c0_i32_1 : i32, i32, i32
  }
  func.func @transform_4(%arg0: i32) -> (i32, i32) {
    %c0_i32 = arith.constant 0 : i32
    %c0_i32_0 = arith.constant 0 : i32
    %c0_i32_1 = arith.constant 0 : i32
    return %c0_i32, %c0_i32_0 : i32, i32
  }
  func.func @transform_5(%arg0: i32) -> (i32, i32, i32) {
    %c0_i32 = arith.constant 0 : i32
    %c0_i32_0 = arith.constant 0 : i32
    %c0_i32_1 = arith.constant 0 : i32
    return %arg0, %c0_i32, %c0_i32_0 : i32, i32, i32
  }
}

</mosaic_0001>

<bundles_post_ra>
// kernel: block_forward.1
= control target key start
LH: loop header
LB: loop body
LE: loop exit
PB: predicated region body
PF: predicated region fallthrough
CT: control target
= control target key end

     0   :  { %s2852_s18 = smov 0   ;;  %s3131_s0 = inlined_call_operand.vmem [shape: f32[2,4,512], index: 0, kind: input, shape index: {}]   ;;  %s3132_s1 = inlined_call_operand.vmem [shape: f32[9,8,4], index: 1, kind: input, shape index: {}]   ;;  %s3133_s2 = inlined_call_operand.vmem [shape: f32[8,1], index: 2, kind: input, shape index: {}]   ;;  %s3134_s3 = inlined_call_operand.vmem [shape: f32[9,8,8], index: 3, kind: input, shape index: {}]   ;;  %s3135_s4 = inlined_call_operand.vmem [shape: f32[8,1], index: 4, kind: input, shape index: {}]   ;;  %s3136_s5 = inlined_call_operand.vmem [shape: f32[2,8,256], index: 5, kind: output, shape index: {}]  }
   0x1 LB: > { %s2635_s19 = sadd.s32 4294967295, %s2809_s18   ;;  %p2639_p0 = scmp.ge.s32.totalorder %s2809_s18, 1  ;;  %s2809_s18 = sphi %s2852_s18, %s15_s18  }
   0x2   : > { %p187_p1 = scmp.lt.s32.totalorder %s2809_s18, 3 }
   0x4   : > { %p188_p2 = pnand %p2639_p0, %p187_p1 }
   0x5   : > { %p215_p3 = scmp.lt.s32.totalorder (!%p188_p2), %s2635_s19, 1  ;;  %s2813_s24 = smov (!%p188_p2), 127  }
   0x6   : > { %191 = sbr.rel (%p188_p2) target bundleno = 752 (0x2f0), region = 40  ;;  %s2814_s27 = smov (!%p188_p2), 126  }
   0x7   : > { %s2815_s28 = smov (!%p188_p2), 112   ;;  %s2816_s29 = smov (!%p188_p2), 111  }
   0x8   : > { %s2817_s30 = smov (!%p188_p2), 110   ;;  %s2818_s6 = smov (!%p188_p2), 96  }
   0x9   : > { %s2819_s7 = smov (!%p188_p2), 95   ;;  %s2821_s8 = smov (!%p188_p2), 94  }
   0xb   : > { %v2811_v0 = vmov 0.0   ;;  %s3138_s19 = smov (!%p215_p3, %s2635_s19), 1  ;;  %vm2812_vm0 = vmmov 0   ;;  %vm241_vm1 = vcmask 1043456   ;;  %v231_v5 = vld [vmem:[%s3132_s1] sm:$0xff]  ;;  %vm237_vm2 = vcmask 31744  }
   0xc   : > { %312 = vmatprep.mubr.f32.mxu0 %v2811_v0  ;;  %2736 = vmatprep.subr.mxu1 %v2811_v0  ;;  %s2716_s20 = sshll.u32 %s3138_s19, 4  ;;  %v2820_v7 = vmov 0   ;;  %v225_v8 = vld [vmem:[%s3133_s2] sm:$0xff]  ;;  %vm408_vm3 = vcmask 1039360   ;;  %vm581_vm4 = vcmask 1031168   ;;  %v2649_v15 = vld [vmem:[%s3132_s1 + $0x8] sm:$0xff] }
   0xd   : > { %2738 = vmatprep.mubr.msk.f32.mxu1 %vm2812_vm0, %v2811_v0  ;;  %s219_s23 = scalar_lea.vmem %s3131_s0, %s2716_s20  ;;  %2800 = vset.pattern.permute.xlu0 %v2820_v7  ;;  %v2655_v22 = vld [vmem:[%s3132_s1 + $0x10] sm:$0xff]  ;;  %vm754_vm5 = vcmask 916480   ;;  %v2661_v30 = vld [vmem:[%s3132_s1 + $0x18] sm:$0xff]  ;;  %vm927_vm6 = vcmask 908288   ;;  %v2667_v38 = vld [vmem:[%s3132_s1 + $0x20] sm:$0xff]  ;;  %vm1100_vm7 = vcmask 900096   ;;  %s224_s13 = scalar_lea.vmem %s3136_s5, %s2716_s20 }
   0xe   : > { %v395_v1 = vld [vmem:[%s219_s23 + $0x8] sm:$0xff]  ;;  %v394_v2 = vld [vmem:[%s219_s23] sm:$0xff]  ;;  %vm1273_vm8 = vcmask 785408   ;;  %v2679_v54 = vld [vmem:[%s3132_s1 + $0x30] sm:$0xff]  ;;  %vm1446_vm9 = vcmask 777216   ;;  %vm1619_vm10 = vcmask 769024  }
   0xf   : > { %v233_v3 = vld [vmem:[%s219_s23 + $0x8] sm:$0xf]  ;;  %404 = vrot.lane.b32.xlu0 %v395_v1, %s2813_s24  ;;  %400 = vrot.lane.b32.xlu1 %v394_v2, %s2813_s24  ;;  %v398_v4 = vcombine.high %v394_v2, %v394_v2  ;;  %v399_v6 = vcombine.high %v395_v1, %v395_v1  ;;  %v2685_v62 = vld [vmem:[%s3132_s1 + $0x38] sm:$0xff]  ;;  %vm1791_vm11 = vcmask 64512  }
  0x10   : > { %2737 = vmatpush3.msk.msra.mxu1 %vm241_vm1, %v233_v3  ;;  %v2673_v46 = vld [vmem:[%s3132_s1 + $0x28] sm:$0xff]  ;;  %v2691_v7 = vld [vmem:[%s3132_s1 + $0x40] sm:$0xff] }
  0x11   : > { %2644 = vmatprep.subr.msk.mxu0 %vm241_vm1, %v398_v4  ;;  %2741 = vmatprep.subr.mxu1 %v2811_v0 }
  0x12   : > { %2645 = vmatpush1.msk.msra.mxu0 %vm241_vm1, %v394_v2  ;;  %2739 = vmatmul.mubr.msk.f32.vlgmr.msra.gmra.mxu1 %vm237_vm2, %v231_v5 }
  0x13   : > { %577 = vrot.lane.b32.xlu1 %v395_v1, %s2814_s27  ;;  %402 = vrot.lane.b32.xlu0 %v398_v4, %s2813_s24 }
  0x14   : > { %2646 = vmatmul.mubr.msk.f32.vlgmr.msra.gmra.mxu0 %vm237_vm2, %v231_v5  ;;  %2743 = vmatprep.mubr.msk.f32.mxu1 %vm2812_vm0, %v2811_v0 }
  0x15   : > { %485 = vmatprep.mubr.f32.mxu0 %v2811_v0 }
  0x17   : > { %406 = vrot.lane.b32.xlu1 %v399_v6, %s2813_s24  ;;  %575 = vrot.lane.b32.xlu0 %v398_v4, %s2814_s27 }
  0x1b   : > { %579 = vrot.lane.b32.xlu1 %v399_v6, %s2814_s27  ;;  %573 = vrot.lane.b32.xlu0 %v394_v2, %s2814_s27 }
  0x1f   : > { %750 = vrot.lane.b32.xlu1 %v395_v1, %s2815_s28  ;;  %748 = vrot.lane.b32.xlu0 %v398_v4, %s2815_s28 }
  0x23   : > { %752 = vrot.lane.b32.xlu1 %v399_v6, %s2815_s28  ;;  %746 = vrot.lane.b32.xlu0 %v394_v2, %s2815_s28 }
  0x27   : > { %923 = vrot.lane.b32.xlu1 %v395_v1, %s2816_s29  ;;  %921 = vrot.lane.b32.xlu0 %v398_v4, %s2816_s29 }
  0x2b   : > { %925 = vrot.lane.b32.xlu1 %v399_v6, %s2816_s29  ;;  %919 = vrot.lane.b32.xlu0 %v394_v2, %s2816_s29 }
  0x2f   : > { %1096 = vrot.lane.b32.xlu1 %v395_v1, %s2817_s30  ;;  %1094 = vrot.lane.b32.xlu0 %v398_v4, %s2817_s30 }
  0x33   : > { %1098 = vrot.lane.b32.xlu1 %v399_v6, %s2817_s30  ;;  %1092 = vrot.lane.b32.xlu0 %v394_v2, %s2817_s30 }
  0x37   : > { %1269 = vrot.lane.b32.xlu1 %v395_v1, %s2818_s6  ;;  %1267 = vrot.lane.b32.xlu0 %v398_v4, %s2818_s6 }
  0x3b   : > { %1271 = vrot.lane.b32.xlu1 %v399_v6, %s2818_s6  ;;  %1265 = vrot.lane.b32.xlu0 %v394_v2, %s2818_s6 }
  0x3f   : > { %1442 = vrot.lane.b32.xlu1 %v395_v1, %s2819_s7  ;;  %1440 = vrot.lane.b32.xlu0 %v398_v4, %s2819_s7 }
  0x43   : > { %1444 = vrot.lane.b32.xlu1 %v399_v6, %s2819_s7  ;;  %1438 = vrot.lane.b32.xlu0 %v394_v2, %s2819_s7 }
  0x47   : > { %1615 = vrot.lane.b32.xlu1 %v395_v1, %s2821_s8  ;;  %1613 = vrot.lane.b32.xlu0 %v398_v4, %s2821_s8 }
  0x4b   : > { %1617 = vrot.lane.b32.xlu1 %v399_v6, %s2821_s8  ;;  %1611 = vrot.lane.b32.xlu0 %v394_v2, %s2821_s8 }
  0x4f   : > { %228 = vperm.xlu0 %2800, %v225_v8  }
  0x81   : > { %v405_v9 = vpop.permute.xlu0 %404  ;;  %v401_v10 = vpop.permute.xlu1 %400 }
  0x85   : > { %v578_v11 = vpop.permute.xlu1 %577  ;;  %v403_v12 = vpop.permute.xlu0 %402 }
  0x86   : > { %v409_v13 = vsel %vm408_vm3, %v401_v10, %v403_v12  ;;  %v410_v14 = vsel %vm408_vm3, %v403_v12, %v405_v9 }
  0x87   : > { %2650 = vmatprep.subr.msk.mxu0 %vm241_vm1, %v410_v14 }
  0x88   : > { %2651 = vmatpush1.msk.msra.mxu0 %vm241_vm1, %v409_v13 }
  0x89   : > { %v407_v16 = vpop.permute.xlu1 %406  ;;  %v576_v17 = vpop.permute.xlu0 %575  ;;  %2652 = vmatmul.mubr.msk.f32.vlgmr.msra.gmra.mxu0 %vm237_vm2, %v2649_v15 }
  0x8a   : > { %v411_v18 = vsel %vm408_vm3, %v405_v9, %v407_v16  ;;  %v583_v19 = vsel %vm581_vm4, %v576_v17, %v578_v11  ;;  %658 = vmatprep.mubr.f32.mxu0 %v2811_v0 }
  0x8b   : > { %2742 = vmatpush3.msk.msra.mxu1 %vm241_vm1, %v411_v18  ;;  %2656 = vmatprep.subr.msk.mxu0 %vm241_vm1, %v583_v19 }
  0x8c   : > { %2746 = vmatprep.subr.mxu1 %v2811_v0  ;;  %2744 = vmatmul.mubr.msk.f32.vlgmr.msra.gmra.mxu1 %vm237_vm2, %v2649_v15 }
  0x8d   : > { %v580_v20 = vpop.permute.xlu1 %579  ;;  %v574_v21 = vpop.permute.xlu0 %573  ;;  %2748 = vmatprep.mubr.msk.f32.mxu1 %vm2812_vm0, %v2811_v0 }
  0x8e   : > { %v584_v23 = vsel %vm581_vm4, %v578_v11, %v580_v20  ;;  %v582_v24 = vsel %vm581_vm4, %v574_v21, %v576_v17 }
  0x8f   : > { %2747 = vmatpush3.msk.msra.mxu1 %vm241_vm1, %v584_v23  ;;  %2657 = vmatpush1.msk.msra.mxu0 %vm241_vm1, %v582_v24 }
  0x90   : > { %2751 = vmatprep.subr.mxu1 %v2811_v0  ;;  %2749 = vmatmul.mubr.msk.f32.vlgmr.msra.gmra.mxu1 %vm237_vm2, %v2655_v22 }
  0x91   : > { %v751_v25 = vpop.permute.xlu1 %750  ;;  %v749_v26 = vpop.permute.xlu0 %748  ;;  %2658 = vmatmul.mubr.msk.f32.vlgmr.msra.gmra.mxu0 %vm237_vm2, %v2655_v22  ;;  %2753 = vmatprep.mubr.msk.f32.mxu1 %vm2812_vm0, %v2811_v0 }
  0x92   : > { %v756_v27 = vsel %vm754_vm5, %v749_v26, %v751_v25  ;;  %831 = vmatprep.mubr.f32.mxu0 %v2811_v0 }
  0x93   : > { %2662 = vmatprep.subr.msk.mxu0 %vm241_vm1, %v756_v27 }
  0x95   : > { %v753_v28 = vpop.permute.xlu1 %752  ;;  %v747_v29 = vpop.permute.xlu0 %746 }
  0x96   : > { %v757_v31 = vsel %vm754_vm5, %v751_v25, %v753_v28  ;;  %v755_v32 = vsel %vm754_vm5, %v747_v29, %v749_v26 }
  0x97   : > { %2752 = vmatpush3.msk.msra.mxu1 %vm241_vm1, %v757_v31  ;;  %2663 = vmatpush1.msk.msra.mxu0 %vm241_vm1, %v755_v32 }
  0x98   : > { %2756 = vmatprep.subr.mxu1 %v2811_v0  ;;  %2754 = vmatmul.mubr.msk.f32.vlgmr.msra.gmra.mxu1 %vm237_vm2, %v2661_v30 }
  0x99   : > { %v924_v33 = vpop.permute.xlu1 %923  ;;  %v922_v34 = vpop.permute.xlu0 %921  ;;  %2664 = vmatmul.mubr.msk.f32.vlgmr.msra.gmra.mxu0 %vm237_vm2, %v2661_v30  ;;  %2758 = vmatprep.mubr.msk.f32.mxu1 %vm2812_vm0, %v2811_v0 }
  0x9a   : > { %v929_v35 = vsel %vm927_vm6, %v922_v34, %v924_v33  ;;  %1004 = vmatprep.mubr.f32.mxu0 %v2811_v0 }
  0x9b   : > { %2668 = vmatprep.subr.msk.mxu0 %vm241_vm1, %v929_v35 }
  0x9d   : > { %v926_v36 = vpop.permute.xlu1 %925  ;;  %v920_v37 = vpop.permute.xlu0 %919 }
  0x9e   : > { %v930_v39 = vsel %vm927_vm6, %v924_v33, %v926_v36  ;;  %v928_v40 = vsel %vm927_vm6, %v920_v37, %v922_v34 }
  0x9f   : > { %2757 = vmatpush3.msk.msra.mxu1 %vm241_vm1, %v930_v39  ;;  %2669 = vmatpush1.msk.msra.mxu0 %vm241_vm1, %v928_v40 }
  0xa0   : > { %2759 = vmatmul.mubr.msk.f32.vlgmr.msra.gmra.mxu1 %vm237_vm2, %v2667_v38  ;;  %2761 = vmatprep.subr.mxu1 %v2811_v0 }
  0xa1   : > { %v1097_v41 = vpop.permute.xlu1 %1096  ;;  %v1095_v42 = vpop.permute.xlu0 %1094  ;;  %2763 = vmatprep.mubr.msk.f32.mxu1 %vm2812_vm0, %v2811_v0  ;;  %2670 = vmatmul.mubr.msk.f32.vlgmr.msra.gmra.mxu0 %vm237_vm2, %v2667_v38 }
  0xa2   : > { %v1102_v43 = vsel %vm1100_vm7, %v1095_v42, %v1097_v41  ;;  %1177 = vmatprep.mubr.f32.mxu0 %v2811_v0 }
  0xa3   : > { %2674 = vmatprep.subr.msk.mxu0 %vm241_vm1, %v1102_v43 }
  0xa5   : > { %v1099_v44 = vpop.permute.xlu1 %1098  ;;  %v1093_v45 = vpop.permute.xlu0 %1092 }
  0xa6   : > { %v1103_v47 = vsel %vm1100_vm7, %v1097_v41, %v1099_v44  ;;  %v1101_v48 = vsel %vm1100_vm7, %v1093_v45, %v1095_v42 }
  0xa7   : > { %2762 = vmatpush3.msk.msra.mxu1 %vm241_vm1, %v1103_v47  ;;  %2675 = vmatpush1.msk.msra.mxu0 %vm241_vm1, %v1101_v48 }
  0xa8   : > { %2764 = vmatmul.mubr.msk.f32.vlgmr.msra.gmra.mxu1 %vm237_vm2, %v2673_v46  ;;  %2766 = vmatprep.subr.mxu1 %v2811_v0 }
  0xa9   : > { %v1270_v49 = vpop.permute.xlu1 %1269  ;;  %v1268_v50 = vpop.permute.xlu0 %1267  ;;  %2768 = vmatprep.mubr.msk.f32.mxu1 %vm2812_vm0, %v2811_v0  ;;  %2676 = vmatmul.mubr.msk.f32.vlgmr.msra.gmra.mxu0 %vm237_vm2, %v2673_v46 }
  0xaa   : > { %v1275_v51 = vsel %vm1273_vm8, %v1268_v50, %v1270_v49  ;;  %1350 = vmatprep.mubr.f32.mxu0 %v2811_v0 }
  0xab   : > { %2680 = vmatprep.subr.msk.mxu0 %vm241_vm1, %v1275_v51 }
  0xad   : > { %v1272_v52 = vpop.permute.xlu1 %1271  ;;  %v1266_v53 = vpop.permute.xlu0 %1265 }
  0xae   : > { %v1276_v55 = vsel %vm1273_vm8, %v1270_v49, %v1272_v52  ;;  %v1274_v56 = vsel %vm1273_vm8, %v1266_v53, %v1268_v50 }
  0xaf   : > { %2767 = vmatpush3.msk.msra.mxu1 %vm241_vm1, %v1276_v55  ;;  %2681 = vmatpush1.msk.msra.mxu0 %vm241_vm1, %v1274_v56 }
  0xb0   : > { %2769 = vmatmul.mubr.msk.f32.vlgmr.msra.gmra.mxu1 %vm237_vm2, %v2679_v54  ;;  %2771 = vmatprep.subr.mxu1 %v2811_v0 }
  0xb1   : > { %v1443_v57 = vpop.permute.xlu1 %1442  ;;  %v1441_v58 = vpop.permute.xlu0 %1440  ;;  %2773 = vmatprep.mubr.msk.f32.mxu1 %vm2812_vm0, %v2811_v0  ;;  %2682 = vmatmul.mubr.msk.f32.vlgmr.msra.gmra.mxu0 %vm237_vm2, %v2679_v54 }
  0xb2   : > { %v1448_v59 = vsel %vm1446_vm9, %v1441_v58, %v1443_v57  ;;  %1523 = vmatprep.mubr.f32.mxu0 %v2811_v0 }
  0xb3   : > { %2686 = vmatprep.subr.msk.mxu0 %vm241_vm1, %v1448_v59 }
  0xb5   : > { %v1445_v60 = vpop.permute.xlu1 %1444  ;;  %v1439_v61 = vpop.permute.xlu0 %1438 }
  0xb6   : > { %v1449_v63 = vsel %vm1446_vm9, %v1443_v57, %v1445_v60  ;;  %v1447_v1 = vsel %vm1446_vm9, %v1439_v61, %v1441_v58 }
  0xb7   : > { %2772 = vmatpush3.msk.msra.mxu1 %vm241_vm1, %v1449_v63  ;;  %2687 = vmatpush1.msk.msra.mxu0 %vm241_vm1, %v1447_v1 }
  0xb8   : > { %2774 = vmatmul.mubr.msk.f32.vlgmr.msra.gmra.mxu1 %vm237_vm2, %v2685_v62  ;;  %2688 = vmatmul.mubr.msk.f32.vlgmr.msra.gmra.mxu0 %vm237_vm2, %v2685_v62 }
  0xb9   : > { %v1616_v2 = vpop.permute.xlu1 %1615  ;;  %v1614_v3 = vpop.permute.xlu0 %1613  ;;  %2776 = vmatprep.subr.mxu1 %v2811_v0  ;;  %1696 = vmatprep.mubr.f32.mxu0 %v2811_v0 }
  0xba   : > { %v1621_v4 = vsel %vm1619_vm10, %v1614_v3, %v1616_v2  ;;  %2778 = vmatprep.mubr.msk.f32.mxu1 %vm2812_vm0, %v2811_v0 }
  0xbb   : > { %2692 = vmatprep.subr.msk.mxu0 %vm241_vm1, %v1621_v4 }
  0xbd   : > { %v1618_v5 = vpop.permute.xlu1 %1617  ;;  %v1612_v6 = vpop.permute.xlu0 %1611 }
  0xbe   : > { %v1622_v8 = vsel %vm1619_vm10, %v1616_v2, %v1618_v5  ;;  %v1620_v9 = vsel %vm1619_vm10, %v1612_v6, %v1614_v3 }
  0xbf   : > { %2693 = vmatpush1.msk.msra.mxu0 %vm241_vm1, %v1620_v9  ;;  %2777 = vmatpush3.msk.msra.mxu1 %vm241_vm1, %v1622_v8 }
  0xc0   : > { %2694 = vmatmul.mubr.msk.f32.vlgmr.msra.gmra.mxu0 %vm237_vm2, %v2691_v7  ;;  %2779 = vmatmul.mubr.msk.f32.vlgmr.msra.gmra.mxu1 %vm237_vm2, %v2691_v7 }
  0xc1   : > { %1859 = vmatprep.mubr.f32.mxu0 %v2811_v0  ;;  %1953 = vmatprep.mubr.f32.mxu1 %v2811_v0 }
  0xca   : > { %v229_v27 = vpop.permute.xlu0 %228 }
  0xd2   : > { %v385_v10 = vpop.f32.mrf.mxu1 }
  0xd3   : > { %v391_v34 = vadd.f32 %v385_v10, %v229_v27 }
  0xd4   : > { %v2740_v11 = vpop.f32.mrf.mxu1  ;;  %v314_v12 = vpop.f32.mrf.mxu0 }
  0xd5   : > { %v389_v29 = vadd.f32 %v314_v12, %v229_v27 }
  0xd6   : > { %v316_v13 = vpop.f32.mrf.mxu0 }
  0xd7   : > { %v390_v31 = vadd.f32 %v316_v13, %v229_v27 }
 0x149   : > { %v487_v14 = vpop.f32.mrf.mxu0 }
 0x14a   : > { %v562_v33 = vadd.f32 %v487_v14, %v389_v29  ;;  %v1788_v14 = vld [vmem:[%s3134_s3] sm:$0xff] }
 0x14b   : > { %v489_v16 = vpop.f32.mrf.mxu0 }
 0x14c   : > { %v558_v15 = vpop.f32.mrf.mxu1  ;;  %v563_v36 = vadd.f32 %v489_v16, %v390_v31 }
 0x14d   : > { %v564_v40 = vadd.f32 %v558_v15, %v391_v34  ;;  %v1782_v15 = vld [vmem:[%s3135_s4] sm:$0xff]  ;;  %v2698_v34 = vld [vmem:[%s3134_s3 + $0x8] sm:$0xff] }
 0x14e   : > { %v2745_v17 = vpop.f32.mrf.mxu1 }
 0x150   : > { %v731_v18 = vpop.f32.mrf.mxu1 }
 0x151   : > { %v660_v19 = vpop.f32.mrf.mxu0  ;;  %v737_v44 = vadd.f32 %v731_v18, %v564_v40 }
 0x152   : > { %v2750_v20 = vpop.f32.mrf.mxu1  ;;  %v735_v38 = vadd.f32 %v660_v19, %v562_v33 }
 0x153   : > { %v662_v21 = vpop.f32.mrf.mxu0 }
 0x154   : > { %v736_v41 = vadd.f32 %v662_v21, %v563_v36 }
 0x158   : > { %v904_v22 = vpop.f32.mrf.mxu1 }
 0x159   : > { %v833_v23 = vpop.f32.mrf.mxu0  ;;  %v910_v50 = vadd.f32 %v904_v22, %v737_v44 }
 0x15a   : > { %v2755_v24 = vpop.f32.mrf.mxu1  ;;  %v908_v43 = vadd.f32 %v833_v23, %v735_v38 }
 0x15b   : > { %v835_v25 = vpop.f32.mrf.mxu0 }
 0x15c   : > { %v909_v46 = vadd.f32 %v835_v25, %v736_v41 }
 0x160   : > { %v1077_v26 = vpop.f32.mrf.mxu1 }
 0x161   : > { %v1006_v28 = vpop.f32.mrf.mxu0  ;;  %v1083_v54 = vadd.f32 %v1077_v26, %v910_v50  ;;  %v2704_v50 = vld [vmem:[%s3134_s3 + $0x20] sm:$0xff] }
 0x162   : > { %v2760_v30 = vpop.f32.mrf.mxu1  ;;  %v1081_v48 = vadd.f32 %v1006_v28, %v908_v43  ;;  %v2700_v43 = vld [vmem:[%s3134_s3 + $0x10] sm:$0xff] }
 0x163   : > { %v1008_v32 = vpop.f32.mrf.mxu0 }
 0x164   : > { %v1082_v52 = vadd.f32 %v1008_v32, %v909_v46 }
 0x168   : > { %v1250_v35 = vpop.f32.mrf.mxu1 }
 0x169   : > { %v1179_v37 = vpop.f32.mrf.mxu0  ;;  %v1256_v60 = vadd.f32 %v1250_v35, %v1083_v54 }
 0x16a   : > { %v2765_v39 = vpop.f32.mrf.mxu1  ;;  %v1254_v53 = vadd.f32 %v1179_v37, %v1081_v48 }
 0x16b   : > { %v1181_v42 = vpop.f32.mrf.mxu0 }
 0x16c   : > { %v1255_v57 = vadd.f32 %v1181_v42, %v1082_v52  ;;  %v2702_v42 = vld [vmem:[%s3134_s3 + $0x18] sm:$0xff] }
 0x170   : > { %v1423_v45 = vpop.f32.mrf.mxu1 }
 0x171   : > { %v1352_v47 = vpop.f32.mrf.mxu0  ;;  %v1429_v62 = vadd.f32 %v1423_v45, %v1256_v60 }
 0x172   : > { %v2770_v49 = vpop.f32.mrf.mxu1  ;;  %v1427_v58 = vadd.f32 %v1352_v47, %v1254_v53 }
 0x173   : > { %v1354_v51 = vpop.f32.mrf.mxu0 }
 0x174   : > { %v1428_v63 = vadd.f32 %v1354_v51, %v1255_v57  ;;  %v2706_v51 = vld [vmem:[%s3134_s3 + $0x28] sm:$0xff]  ;;  %v2710_v57 = vld [vmem:[%s3134_s3 + $0x38] sm:$0xff] }
 0x178   : > { %v1596_v55 = vpop.f32.mrf.mxu1  ;;  %v1525_v56 = vpop.f32.mrf.mxu0 }
 0x179   : > { %v1600_v1 = vadd.f32 %v1525_v56, %v1427_v58  ;;  %v1602_v2 = vadd.f32 %v1596_v55, %v1429_v62  ;;  %v2708_v56 = vld [vmem:[%s3134_s3 + $0x30] sm:$0xff]  ;;  %v2712_v62 = vld [vmem:[%s3134_s3 + $0x40] sm:$0xff] }
 0x17a   : > { %v2775_v59 = vpop.f32.mrf.mxu1  ;;  %v1527_v61 = vpop.f32.mrf.mxu0 }
 0x17b   : > { %v1601_v5 = vadd.f32 %v1527_v61, %v1428_v63 }
 0x180   : > { %v1698_v3 = vpop.f32.mrf.mxu0  ;;  %v1769_v4 = vpop.f32.mrf.mxu1 }
 0x181   : > { %v1775_v6 = vadd.f32 %v1769_v4, %v1602_v2  ;;  %v1773_v7 = vadd.f32 %v1698_v3, %v1600_v1 }
 0x182   : > { %v1700_v8 = vpop.f32.mrf.mxu0  ;;  %v2780_v9 = vpop.f32.mrf.mxu1 }
 0x183   : > { %v1778_v10 = vmax.f32 %v1775_v6, 0.0  ;;  %v1774_v11 = vadd.f32 %v1700_v8, %v1601_v5  ;;  %v1776_v13 = vmax.f32 %v1773_v7, 0.0 }
 0x185   : > { %v1777_v12 = vmax.f32 %v1774_v11, 0.0  ;;  %1968 = vrot.lane.b32.xlu0 %v1778_v10, %s2814_s27  ;;  %1880 = vrot.lane.b32.xlu1 %v1778_v10, %s2813_s24 }
 0x187   : > { %1825 = vmatprep.subr.mxu0 %v1777_v12 }
 0x188   : > { %1826 = vmatpush1.msra.mxu0 %v1776_v13 }
 0x189   : > { %2144 = vrot.lane.b32.xlu0 %v1778_v10, %s2816_s29  ;;  %2056 = vrot.lane.b32.xlu1 %v1778_v10, %s2815_s28 }
 0x18a   : > { %2697 = vmatmul.mubr.msk.f32.vlgmr.msra.gmra.mxu0 %vm1791_vm11, %v1788_v14 }
 0x18b   : > { %2041 = vmatprep.mubr.f32.mxu0 %v2811_v0 }
 0x18d   : > { %2320 = vrot.lane.b32.xlu0 %v1778_v10, %s2818_s6  ;;  %2232 = vrot.lane.b32.xlu1 %v1778_v10, %s2817_s30 }
 0x191   : > { %2408 = vrot.lane.b32.xlu1 %v1778_v10, %s2819_s7  ;;  %1876 = vrot.lane.b32.xlu0 %v1776_v13, %s2813_s24 }
 0x195   : > { %1964 = vrot.lane.b32.xlu1 %v1776_v13, %s2814_s27  ;;  %2052 = vrot.lane.b32.xlu0 %v1776_v13, %s2815_s28 }
 0x199   : > { %2140 = vrot.lane.b32.xlu1 %v1776_v13, %s2816_s29  ;;  %2228 = vrot.lane.b32.xlu0 %v1776_v13, %s2817_s30 }
 0x19d   : > { %2316 = vrot.lane.b32.xlu1 %v1776_v13, %s2818_s6  ;;  %2404 = vrot.lane.b32.xlu0 %v1776_v13, %s2819_s7 }
 0x1a1   : > { %2054 = vrot.lane.b32.xlu0 %v1777_v12, %s2815_s28  ;;  %1878 = vrot.lane.b32.xlu1 %v1777_v12, %s2813_s24 }
 0x1a5   : > { %2230 = vrot.lane.b32.xlu0 %v1777_v12, %s2817_s30  ;;  %1966 = vrot.lane.b32.xlu1 %v1777_v12, %s2814_s27 }
 0x1a9   : > { %2406 = vrot.lane.b32.xlu0 %v1777_v12, %s2819_s7  ;;  %2142 = vrot.lane.b32.xlu1 %v1777_v12, %s2816_s29 }
 0x1ad   : > { %2496 = vrot.lane.b32.xlu0 %v1778_v10, %s2821_s8  ;;  %2318 = vrot.lane.b32.xlu1 %v1777_v12, %s2818_s6 }
 0x1b1   : > { %1785 = vperm.xlu0 %2800, %v1782_v15   ;;  %2494 = vrot.lane.b32.xlu1 %v1777_v12, %s2821_s8 }
 0x1b5   : > { %2492 = vrot.lane.b32.xlu1 %v1776_v13, %s2821_s8 }
 0x1f7   : > { %v1969_v16 = vpop.permute.xlu0 %1968  ;;  %v1881_v17 = vpop.permute.xlu1 %1880 }
 0x1fb   : > { %v2145_v18 = vpop.permute.xlu0 %2144  ;;  %v2057_v19 = vpop.permute.xlu1 %2056 }
 0x1ff   : > { %v2321_v20 = vpop.permute.xlu0 %2320  ;;  %v2233_v21 = vpop.permute.xlu1 %2232 }
 0x203   : > { %v2409_v22 = vpop.permute.xlu1 %2408  ;;  %v1877_v23 = vpop.permute.xlu0 %1876 }
 0x207   : > { %v1965_v24 = vpop.permute.xlu1 %1964  ;;  %v2053_v25 = vpop.permute.xlu0 %2052 }
 0x20b   : > { %v2141_v26 = vpop.permute.xlu1 %2140  ;;  %v2229_v27 = vpop.permute.xlu0 %2228 }
 0x20f   : > { %v2317_v28 = vpop.permute.xlu1 %2316  ;;  %v2405_v29 = vpop.permute.xlu0 %2404 }
 0x213   : > { %v2055_v30 = vpop.permute.xlu0 %2054  ;;  %v1879_v31 = vpop.permute.xlu1 %1878 }
 0x214   : > { %v1882_v32 = vsel %vm408_vm3, %v1877_v23, %v1879_v31  ;;  %v1883_v33 = vsel %vm408_vm3, %v1879_v31, %v1881_v17  ;;  %v2059_v35 = vsel %vm754_vm5, %v2055_v30, %v2057_v19  ;;  %v2058_v36 = vsel %vm754_vm5, %v2053_v25, %v2055_v30 }
 0x215   : > { %1919 = vmatprep.subr.mxu1 %v1883_v33 }
 0x216   : > { %1920 = vmatpush1.msra.mxu1 %v1882_v32 }
 0x217   : > { %v2231_v37 = vpop.permute.xlu0 %2230  ;;  %2699 = vmatmul.mubr.msk.f32.vlgmr.msra.gmra.mxu1 %vm1791_vm11, %v2698_v34  ;;  %2095 = vmatprep.subr.mxu1 %v2059_v35  ;;  %v1967_v38 = vpop.permute.xlu1 %1966 }
 0x218   : > { %v1970_v39 = vsel %vm581_vm4, %v1965_v24, %v1967_v38  ;;  %2096 = vmatpush1.msra.mxu1 %v2058_v36  ;;  %v1971_v40 = vsel %vm581_vm4, %v1967_v38, %v1969_v16  ;;  %v2235_v41 = vsel %vm1100_vm7, %v2231_v37, %v2233_v21  ;;  %2129 = vmatprep.mubr.f32.mxu1 %v2811_v0 }
 0x219   : > { %2007 = vmatprep.subr.mxu0 %v1971_v40  ;;  %2271 = vmatprep.subr.mxu1 %v2235_v41  ;;  %v2234_v44 = vsel %vm1100_vm7, %v2229_v27, %v2231_v37 }
 0x21a   : > { %2008 = vmatpush1.msra.mxu0 %v1970_v39 }
 0x21b   : > { %v2407_v45 = vpop.permute.xlu0 %2406  ;;  %2703 = vmatmul.mubr.msk.f32.vlgmr.msra.gmra.mxu1 %vm1791_vm11, %v2702_v42  ;;  %v2143_v46 = vpop.permute.xlu1 %2142  ;;  %2701 = vmatmul.mubr.msk.f32.vlgmr.msra.gmra.mxu0 %vm1791_vm11, %v2700_v43 }
 0x21c   : > { %2272 = vmatpush1.msra.mxu1 %v2234_v44  ;;  %v2146_v47 = vsel %vm927_vm6, %v2141_v26, %v2143_v46  ;;  %v2147_v48 = vsel %vm927_vm6, %v2143_v46, %v2145_v18  ;;  %v2411_v49 = vsel %vm1446_vm9, %v2407_v45, %v2409_v22  ;;  %2217 = vmatprep.mubr.f32.mxu0 %v2811_v0 }
 0x21d   : > { %2183 = vmatprep.subr.mxu0 %v2147_v48  ;;  %2447 = vmatprep.subr.mxu1 %v2411_v49  ;;  %v2410_v53 = vsel %vm1446_vm9, %v2405_v29, %v2407_v45 }
 0x21e   : > { %2184 = vmatpush1.msra.mxu0 %v2146_v47  ;;  %2305 = vmatprep.mubr.f32.mxu1 %v2811_v0 }
 0x21f   : > { %v2319_v52 = vpop.permute.xlu1 %2318  ;;  %2705 = vmatmul.mubr.msk.f32.vlgmr.msra.gmra.mxu0 %vm1791_vm11, %v2704_v50  ;;  %2707 = vmatmul.mubr.msk.f32.vlgmr.msra.gmra.mxu1 %vm1791_vm11, %v2706_v51  ;;  %v2497_v58 = vpop.permute.xlu0 %2496 }
 0x220   : > { %v2322_v54 = vsel %vm1273_vm8, %v2317_v28, %v2319_v52  ;;  %v2323_v55 = vsel %vm1273_vm8, %v2319_v52, %v2321_v20  ;;  %2393 = vmatprep.mubr.f32.mxu0 %v2811_v0  ;;  %2448 = vmatpush1.msra.mxu1 %v2410_v53 }
 0x221   : > { %2359 = vmatprep.subr.mxu0 %v2323_v55  ;;  %2481 = vmatprep.mubr.f32.mxu1 %v2811_v0 }
 0x222   : > { %2360 = vmatpush1.msra.mxu0 %v2322_v54 }
 0x223   : > { %v2495_v59 = vpop.permute.xlu1 %2494  ;;  %2709 = vmatmul.mubr.msk.f32.vlgmr.msra.gmra.mxu0 %vm1791_vm11, %v2708_v56  ;;  %2711 = vmatmul.mubr.msk.f32.vlgmr.msra.gmra.mxu1 %vm1791_vm11, %v2710_v57 }
 0x224   : > { %v2499_v60 = vsel %vm1619_vm10, %v2495_v59, %v2497_v58  ;;  %2569 = vmatprep.mubr.f32.mxu0 %v2811_v0 }
 0x225   : > { %2535 = vmatprep.subr.mxu0 %v2499_v60 }
 0x227   : > { %v2493_v61 = vpop.permute.xlu1 %2492 }
 0x228   : > { %v2498_v63 = vsel %vm1619_vm10, %v2493_v61, %v2495_v59 }
 0x229   : > { %2536 = vmatpush1.msra.mxu0 %v2498_v63 }
 0x22a   : > { %2713 = vmatmul.mubr.msk.f32.vlgmr.msra.gmra.mxu0 %vm1791_vm11, %v2712_v62 }
 0x22c   : > { %v1786_v2 = vpop.permute.xlu0 %1785 }
 0x24a   : > { %v1861_v1 = vpop.f32.mrf.mxu0 }
 0x24b   : > { %v1866_v5 = vadd.f32 %v1861_v1, %v1786_v2 }
 0x24c   : > { %v1863_v3 = vpop.f32.mrf.mxu0 }
 0x24d   : > { %v1867_v7 = vadd.f32 %v1863_v3, %v1786_v2 }
 0x2d7   : > { %v1955_v4 = vpop.f32.mrf.mxu1 }
 0x2d8   : > { %v1960_v8 = vadd.f32 %v1955_v4, %v1866_v5 }
 0x2d9   : > { %v1957_v6 = vpop.f32.mrf.mxu1 }
 0x2da   : > { %v1961_v10 = vadd.f32 %v1957_v6, %v1867_v7 }
 0x2db   : > { %v2043_v0 = vpop.f32.mrf.mxu0  ;;  %v2131_v9 = vpop.f32.mrf.mxu1 }
 0x2dc   : > { %v2048_v11 = vadd.f32 %v2043_v0, %v1960_v8 }
 0x2dd   : > { %v2045_v12 = vpop.f32.mrf.mxu0  ;;  %v2133_v13 = vpop.f32.mrf.mxu1 }
 0x2de   : > { %v2049_v14 = vadd.f32 %v2045_v12, %v1961_v10  ;;  %v2136_v15 = vadd.f32 %v2131_v9, %v2048_v11 }
 0x2df   : > { %v2219_v16 = vpop.f32.mrf.mxu0  ;;  %v2307_v19 = vpop.f32.mrf.mxu1 }
 0x2e0   : > { %v2137_v17 = vadd.f32 %v2133_v13, %v2049_v14  ;;  %v2224_v18 = vadd.f32 %v2219_v16, %v2136_v15 }
 0x2e1   : > { %v2221_v20 = vpop.f32.mrf.mxu0  ;;  %v2309_v23 = vpop.f32.mrf.mxu1 }
 0x2e2   : > { %v2225_v21 = vadd.f32 %v2221_v20, %v2137_v17  ;;  %v2312_v22 = vadd.f32 %v2307_v19, %v2224_v18 }
 0x2e3   : > { %v2395_v24 = vpop.f32.mrf.mxu0  ;;  %v2483_v26 = vpop.f32.mrf.mxu1 }
 0x2e4   : > { %v2313_v25 = vadd.f32 %v2309_v23, %v2225_v21  ;;  %v2400_v27 = vadd.f32 %v2395_v24, %v2312_v22 }
 0x2e5   : > { %v2397_v28 = vpop.f32.mrf.mxu0  ;;  %v2485_v30 = vpop.f32.mrf.mxu1 }
 0x2e6   : > { %v2401_v29 = vadd.f32 %v2397_v28, %v2313_v25  ;;  %v2488_v31 = vadd.f32 %v2483_v26, %v2400_v27 }
 0x2e8   : > { %v2489_v33 = vadd.f32 %v2485_v30, %v2401_v29 }
 0x2ea   : > { %v2571_v32 = vpop.f32.mrf.mxu0 }
 0x2eb   : > { %v2576_v34 = vadd.f32 %v2571_v32, %v2488_v31 }
 0x2ec   : > { %v2573_v35 = vpop.f32.mrf.mxu0 }
 0x2ed   : > { %2578 = vst [vmem:[%s224_s13] sm:$0xff] %v2576_v34  ;;  %v2577_v36 = vadd.f32 %v2573_v35, %v2489_v33 }
 0x2ef   : > { %2579 = vst [vmem:[%s224_s13 + $0x8] sm:$0xff] %v2577_v36 }
 0x2f0 PF: > { %s15_s18 = sadd.s32 1, %s2809_s18  }
 0x2f1   : > { %p12_p4 = scmp.ge.s32.totalorder %s15_s18, 4  }
 0x2f3   :  { %14 = sbr.rel (!%p12_p4) target bundleno = 1 (0x1), region = 86 }

</bundles_post_ra>
